<compile_context>
chip_gen: v6e
topology: v6e:2x2x1
jax: 0.10.0
libtpu: 0.0.40
codegen_flags: <defaults>
</compile_context>

<pallas_src>
import jax
import jax.numpy as jnp
from jax.experimental import pallas as pl
from jax.experimental.pallas import tpu as pltpu

EPS = 1e-5


def betting_nn_kernel(x_ref, w1_ref, w2_ref, w3_ref, w4_ref, w5_ref, bias_ref,
                      o_ref):
    xt = x_ref[...].astype(jnp.float32)          # (in_dim, TB), batch on lanes
    in_dim = xt.shape[0]

    d3 = w3_ref.shape[0]                         # 64
    d4 = w4_ref.shape[0]                         # 32

    bias = bias_ref[...]                         # (128, 8) f32, col j = bias of layer j+1
    b1 = bias[:, 0:1]                            # (128, 1)
    b2 = bias[:, 1:2]                            # (128, 1)
    b3 = bias[:d3, 2:3]                          # (64, 1)
    b4 = bias[:d4, 3:4]                          # (32, 1)
    b5 = bias[:1, 4:5]                           # (1, 1)

    # Layer 1 (BN folded): contraction dim is tiny (input_dim=3) -> VPU
    # broadcast-FMAs instead of a mostly-padded MXU matmul.
    w1 = w1_ref[...].astype(jnp.float32)         # (128, in_dim)
    h = w1[:, 0:1] * xt[0:1, :]                  # (128, TB)
    for k in range(1, in_dim):                   # static loop, in_dim known at trace time
        h = h + w1[:, k:k + 1] * xt[k:k + 1, :]
    h = jnp.maximum(h + b1, 0.0)                 # (128, TB)

    def dense(w_ref, b, a):
        w = w_ref[...]
        return jnp.dot(w, a.astype(w.dtype),
                       preferred_element_type=jnp.float32) + b

    # Layer 2 (BN folded) + ReLU
    h = jnp.maximum(dense(w2_ref, b2, h), 0.0)   # (128, TB)
    # Layer 3 (BN folded) + ReLU
    h = jnp.maximum(dense(w3_ref, b3, h), 0.0)   # (64, TB)
    # Layer 4 + ReLU
    h = jnp.maximum(dense(w4_ref, b4, h), 0.0)   # (32, TB)
    # Layer 5 + Sigmoid
    z = dense(w5_ref, b5, h)                     # (1, TB)
    o_ref[...] = (1.0 / (1.0 + jnp.exp(-z)))[None]   # (1, 1, TB) lane-dense store


def _fold_bn(w, b, gamma, beta, mean, var):
    """Fold eval-mode BatchNorm1d into the preceding Linear (W: (out,in), b: (out,))."""
    s = gamma * jax.lax.rsqrt(var + EPS)
    return w * s[:, None], s * (b - mean) + beta


def _prepare_params(params, param_dtype):
    w1, b1 = _fold_bn(params["w1"], params["b1"], params["g1"], params["be1"],
                      params["m1"], params["v1"])
    w2, b2 = _fold_bn(params["w2"], params["b2"], params["g2"], params["be2"],
                      params["m2"], params["v2"])
    w3, b3 = _fold_bn(params["w3"], params["b3"], params["g3"], params["be3"],
                      params["m3"], params["v3"])
    w4, b4 = params["w4"], params["b4"]
    w5, b5 = params["w5"], params["b5"]

    biases = (b1, b2, b3, b4, b5)
    rows = max(b.shape[0] for b in biases)       # 128
    slab = jnp.zeros((rows, 8), jnp.float32)
    for j, b in enumerate(biases):
        slab = slab.at[: b.shape[0], j].set(b.astype(jnp.float32))

    weights = tuple(w.astype(param_dtype) for w in (w1, w2, w3, w4, w5))
    return weights, slab


def betting_nn_forward(x, params, *, block_batch=None, param_dtype=jnp.float32):
    batch, in_dim = x.shape
    if block_batch is None:
        # Multiple of 256 covers the MXU height on v5e/v6e/v7x; large tiles
        # amortize the ~0.35us/step overhead, capped for VMEM headroom.
        block_batch = min(2048, ((max(batch, 1) + 255) // 256) * 256)
    tb = int(block_batch)
    assert tb % 128 == 0, "block_batch must be a multiple of 128"

    b_pad = ((batch + tb - 1) // tb) * tb
    n_tiles = b_pad // tb

    # Transposed, zero-padded input: (in_dim, b_pad) with batch on the lane axis.
    xt = jnp.pad(x.astype(jnp.float32).T, ((0, 0), (0, b_pad - batch)))
    (w1, w2, w3, w4, w5), bias_slab = _prepare_params(params, param_dtype)

    def const2(i):
        return (0, 0)

    in_specs = [
        pl.BlockSpec((in_dim, tb), lambda i: (0, i)),  # x tile, batch on lanes
        pl.BlockSpec(w1.shape, const2),                # weights stay resident
        pl.BlockSpec(w2.shape, const2),
        pl.BlockSpec(w3.shape, const2),
        pl.BlockSpec(w4.shape, const2),
        pl.BlockSpec(w5.shape, const2),
        pl.BlockSpec(bias_slab.shape, const2),         # packed bias slab
    ]
    out_spec = pl.BlockSpec((1, 1, tb), lambda i: (i, 0, 0))

    out_pad = pl.pallas_call(
        betting_nn_kernel,
        out_shape=jax.ShapeDtypeStruct((n_tiles, 1, tb), jnp.float32),
        grid_spec=pltpu.PrefetchScalarGridSpec(
            num_scalar_prefetch=0,
            grid=(n_tiles,),
            in_specs=in_specs,
            out_specs=out_spec,
        ),
        compiler_params=pltpu.CompilerParams(
            dimension_semantics=("parallel",),      # shards batch across TCs on v7x
            vmem_limit_bytes=32 * 1024 * 1024,
        ),
    )(xt, w1, w2, w3, w4, w5, bias_slab)

    return out_pad.reshape(-1)[:batch].reshape(batch, 1)


def init_params(key, input_dim=3):
    """Deterministic params matching the PyTorch module shapes.

    Linear weights in PyTorch orientation (out_features, in_features); biases (out,).
    BatchNorm params gamma/beta/running_mean/running_var each (d,).
    """
    dims = [(input_dim, 128), (128, 128), (128, 64), (64, 32), (32, 1)]
    keys = jax.random.split(key, 2 * len(dims) + 4 * 3)
    params = {}
    ki = 0
    for idx, (din, dout) in enumerate(dims, start=1):
        bound = 1.0 / float(din) ** 0.5
        params[f"w{idx}"] = jax.random.uniform(keys[ki], (dout, din), jnp.float32,
                                               -bound, bound); ki += 1
        params[f"b{idx}"] = jax.random.uniform(keys[ki], (dout,), jnp.float32,
                                               -bound, bound); ki += 1
    for idx, d in zip((1, 2, 3), (128, 128, 64)):
        params[f"g{idx}"] = 1.0 + 0.1 * jax.random.normal(keys[ki], (d,), jnp.float32); ki += 1
        params[f"be{idx}"] = 0.1 * jax.random.normal(keys[ki], (d,), jnp.float32); ki += 1
        params[f"m{idx}"] = 0.05 * jax.random.normal(keys[ki], (d,), jnp.float32); ki += 1
        params[f"v{idx}"] = 1.0 + 0.1 * jnp.abs(jax.random.normal(keys[ki], (d,), jnp.float32)); ki += 1
    return params


def ref_forward(x, p):
    """Pure-JAX reference on the raw (unfolded) params (eval-mode BN)."""
    def bn(h, g, beta, m, v):
        return g * (h - m) * jax.lax.rsqrt(v + EPS) + beta

    h = x @ p["w1"].T + p["b1"]
    h = jnp.maximum(bn(h, p["g1"], p["be1"], p["m1"], p["v1"]), 0.0)
    h = h @ p["w2"].T + p["b2"]
    h = jnp.maximum(bn(h, p["g2"], p["be2"], p["m2"], p["v2"]), 0.0)
    h = h @ p["w3"].T + p["b3"]
    h = jnp.maximum(bn(h, p["g3"], p["be3"], p["m3"], p["v3"]), 0.0)
    h = jnp.maximum(h @ p["w4"].T + p["b4"], 0.0)
    z = h @ p["w5"].T + p["b5"]
    return 1.0 / (1.0 + jnp.exp(-z))


if __name__ == "__main__":
    key = jax.random.PRNGKey(0)
    k_x, k_p, k_x2 = jax.random.split(key, 3)

    input_dim = 3
    params = init_params(k_p, input_dim=input_dim)

    # Small-batch case (single tile, padded).
    batch = 8
    x = jax.random.normal(k_x, (batch, input_dim), jnp.float32)
    out = jax.block_until_ready(betting_nn_forward(x, params))
    expected = ref_forward(x, params)
    assert out.shape == (batch, 1), out.shape
    assert bool(jnp.allclose(out, expected, atol=1e-4, rtol=1e-4)), (out, expected)

    # Multi-tile case exercising grid pipelining + tail padding.
    batch2 = 300
    x2 = jax.random.normal(k_x2, (batch2, input_dim), jnp.float32)
    out2 = jax.block_until_ready(betting_nn_forward(x2, params, block_batch=128))
    expected2 = ref_forward(x2, params)
    assert out2.shape == (batch2, 1), out2.shape
    assert bool(jnp.allclose(out2, expected2, atol=1e-4, rtol=1e-4))

    print("KERNEL_OK")
</pallas_src>

<mosaic_0001>
module attributes {stable_mosaic.version = 11 : i64} {
  func.func @betting_nn_kernel(%arg0: i32, %arg1: memref<3x256xf32, #tpu.memory_space<vmem>>, %arg2: memref<128x3xf32, #tpu.memory_space<vmem>>, %arg3: memref<128x128xf32, #tpu.memory_space<vmem>>, %arg4: memref<64x128xf32, #tpu.memory_space<vmem>>, %arg5: memref<32x64xf32, #tpu.memory_space<vmem>>, %arg6: memref<1x32xf32, #tpu.memory_space<vmem>>, %arg7: memref<128x8xf32, #tpu.memory_space<vmem>>, %arg8: memref<1x1x256xf32, #tpu.memory_space<vmem>>) attributes {dimension_semantics = [#tpu.dimension_semantics<parallel>], iteration_bounds = array<i64: 1>, scalar_prefetch = 0 : i64, scratch_operands = 0 : i64, tpu.core_type = #tpu.core_type<tc>, window_params = [{transform_indices = @transform_0, window_bounds = array<i64: 3, 256>}, {pipeline_mode = #tpu.pipeline_mode<synchronous>, transform_indices = @transform_1, window_bounds = array<i64: 128, 3>}, {pipeline_mode = #tpu.pipeline_mode<synchronous>, transform_indices = @transform_2, window_bounds = array<i64: 128, 128>}, {pipeline_mode = #tpu.pipeline_mode<synchronous>, transform_indices = @transform_3, window_bounds = array<i64: 64, 128>}, {pipeline_mode = #tpu.pipeline_mode<synchronous>, transform_indices = @transform_4, window_bounds = array<i64: 32, 64>}, {pipeline_mode = #tpu.pipeline_mode<synchronous>, transform_indices = @transform_5, window_bounds = array<i64: 1, 32>}, {pipeline_mode = #tpu.pipeline_mode<synchronous>, transform_indices = @transform_6, window_bounds = array<i64: 128, 8>}, {transform_indices = @transform_7, window_bounds = array<i64: 1, 1, 256>}]} {
    %c0 = arith.constant 0 : index
    %c0_0 = arith.constant 0 : index
    %0 = vector.load %arg1[%c0, %c0_0] : memref<3x256xf32, #tpu.memory_space<vmem>>, vector<3x256xf32>
    %c0_1 = arith.constant 0 : index
    %c0_2 = arith.constant 0 : index
    %1 = vector.load %arg7[%c0_1, %c0_2] : memref<128x8xf32, #tpu.memory_space<vmem>>, vector<128x8xf32>
    %2 = vector.extract_strided_slice %1 {offsets = [0, 0], sizes = [128, 1], strides = [1, 1]} : vector<128x8xf32> to vector<128x1xf32>
    %3 = vector.extract_strided_slice %1 {offsets = [0, 1], sizes = [128, 1], strides = [1, 1]} : vector<128x8xf32> to vector<128x1xf32>
    %4 = vector.extract_strided_slice %1 {offsets = [0, 2], sizes = [64, 1], strides = [1, 1]} : vector<128x8xf32> to vector<64x1xf32>
    %5 = vector.extract_strided_slice %1 {offsets = [0, 3], sizes = [32, 1], strides = [1, 1]} : vector<128x8xf32> to vector<32x1xf32>
    %6 = vector.extract_strided_slice %1 {offsets = [0, 4], sizes = [1, 1], strides = [1, 1]} : vector<128x8xf32> to vector<1x1xf32>
    %c0_3 = arith.constant 0 : index
    %c0_4 = arith.constant 0 : index
    %7 = vector.load %arg2[%c0_3, %c0_4] : memref<128x3xf32, #tpu.memory_space<vmem>>, vector<128x3xf32>
    %8 = vector.extract_strided_slice %7 {offsets = [0, 0], sizes = [128, 1], strides = [1, 1]} : vector<128x3xf32> to vector<128x1xf32>
    %9 = vector.extract_strided_slice %0 {offsets = [0, 0], sizes = [1, 256], strides = [1, 1]} : vector<3x256xf32> to vector<1x256xf32>
    %10 = vector.broadcast %8 : vector<128x1xf32> to vector<128x256xf32>
    %11 = vector.broadcast %9 : vector<1x256xf32> to vector<128x256xf32>
    %12 = arith.mulf %10, %11 : vector<128x256xf32>
    %13 = vector.extract_strided_slice %7 {offsets = [0, 1], sizes = [128, 1], strides = [1, 1]} : vector<128x3xf32> to vector<128x1xf32>
    %14 = vector.extract_strided_slice %0 {offsets = [1, 0], sizes = [1, 256], strides = [1, 1]} : vector<3x256xf32> to vector<1x256xf32>
    %15 = vector.broadcast %13 : vector<128x1xf32> to vector<128x256xf32>
    %16 = vector.broadcast %14 : vector<1x256xf32> to vector<128x256xf32>
    %17 = arith.mulf %15, %16 : vector<128x256xf32>
    %18 = arith.addf %12, %17 : vector<128x256xf32>
    %19 = vector.extract_strided_slice %7 {offsets = [0, 2], sizes = [128, 1], strides = [1, 1]} : vector<128x3xf32> to vector<128x1xf32>
    %20 = vector.extract_strided_slice %0 {offsets = [2, 0], sizes = [1, 256], strides = [1, 1]} : vector<3x256xf32> to vector<1x256xf32>
    %21 = vector.broadcast %19 : vector<128x1xf32> to vector<128x256xf32>
    %22 = vector.broadcast %20 : vector<1x256xf32> to vector<128x256xf32>
    %23 = arith.mulf %21, %22 : vector<128x256xf32>
    %24 = arith.addf %18, %23 : vector<128x256xf32>
    %25 = vector.broadcast %2 : vector<128x1xf32> to vector<128x256xf32>
    %26 = arith.addf %24, %25 : vector<128x256xf32>
    %cst = arith.constant 0.000000e+00 : f32
    %27 = vector.broadcast %cst : f32 to vector<128x256xf32>
    %28 = arith.maximumf %26, %27 : vector<128x256xf32>
    %c0_5 = arith.constant 0 : index
    %c0_6 = arith.constant 0 : index
    %29 = vector.load %arg3[%c0_5, %c0_6] : memref<128x128xf32, #tpu.memory_space<vmem>>, vector<128x128xf32>
    %cst_7 = arith.constant dense<0.000000e+00> : vector<128x256xf32>
    %30 = tpu.matmul %29, %28, %cst_7 {dimension_numbers = #tpu.dot_dimension_numbers<[1], [0], [0], [1], [0, 0, 1, 1], [], []>} : vector<128x128xf32>, vector<128x256xf32>, vector<128x256xf32> -> vector<128x256xf32>
    %31 = vector.broadcast %3 : vector<128x1xf32> to vector<128x256xf32>
    %32 = arith.addf %30, %31 : vector<128x256xf32>
    %cst_8 = arith.constant 0.000000e+00 : f32
    %33 = vector.broadcast %cst_8 : f32 to vector<128x256xf32>
    %34 = arith.maximumf %32, %33 : vector<128x256xf32>
    %c0_9 = arith.constant 0 : index
    %c0_10 = arith.constant 0 : index
    %35 = vector.load %arg4[%c0_9, %c0_10] : memref<64x128xf32, #tpu.memory_space<vmem>>, vector<64x128xf32>
    %cst_11 = arith.constant dense<0.000000e+00> : vector<64x256xf32>
    %36 = tpu.matmul %35, %34, %cst_11 {dimension_numbers = #tpu.dot_dimension_numbers<[1], [0], [0], [1], [0, 0, 1, 1], [], []>} : vector<64x128xf32>, vector<128x256xf32>, vector<64x256xf32> -> vector<64x256xf32>
    %37 = vector.broadcast %4 : vector<64x1xf32> to vector<64x256xf32>
    %38 = arith.addf %36, %37 : vector<64x256xf32>
    %cst_12 = arith.constant 0.000000e+00 : f32
    %39 = vector.broadcast %cst_12 : f32 to vector<64x256xf32>
    %40 = arith.maximumf %38, %39 : vector<64x256xf32>
    %c0_13 = arith.constant 0 : index
    %c0_14 = arith.constant 0 : index
    %41 = vector.load %arg5[%c0_13, %c0_14] : memref<32x64xf32, #tpu.memory_space<vmem>>, vector<32x64xf32>
    %cst_15 = arith.constant dense<0.000000e+00> : vector<32x256xf32>
    %42 = tpu.matmul %41, %40, %cst_15 {dimension_numbers = #tpu.dot_dimension_numbers<[1], [0], [0], [1], [0, 0, 1, 1], [], []>} : vector<32x64xf32>, vector<64x256xf32>, vector<32x256xf32> -> vector<32x256xf32>
    %43 = vector.broadcast %5 : vector<32x1xf32> to vector<32x256xf32>
    %44 = arith.addf %42, %43 : vector<32x256xf32>
    %cst_16 = arith.constant 0.000000e+00 : f32
    %45 = vector.broadcast %cst_16 : f32 to vector<32x256xf32>
    %46 = arith.maximumf %44, %45 : vector<32x256xf32>
    %c0_17 = arith.constant 0 : index
    %c0_18 = arith.constant 0 : index
    %47 = vector.load %arg6[%c0_17, %c0_18] : memref<1x32xf32, #tpu.memory_space<vmem>>, vector<1x32xf32>
    %cst_19 = arith.constant dense<0.000000e+00> : vector<1x256xf32>
    %48 = tpu.matmul %47, %46, %cst_19 {dimension_numbers = #tpu.dot_dimension_numbers<[1], [0], [0], [1], [0, 0, 1, 1], [], []>} : vector<1x32xf32>, vector<32x256xf32>, vector<1x256xf32> -> vector<1x256xf32>
    %49 = vector.broadcast %6 : vector<1x1xf32> to vector<1x256xf32>
    %50 = arith.addf %48, %49 : vector<1x256xf32>
    %cst_20 = arith.constant 0.000000e+00 : f32
    %51 = vector.broadcast %cst_20 : f32 to vector<1x256xf32>
    %52 = arith.subf %51, %50 : vector<1x256xf32>
    %53 = math.exp %52 : vector<1x256xf32>
    %cst_21 = arith.constant 1.000000e+00 : f32
    %54 = vector.broadcast %cst_21 : f32 to vector<1x256xf32>
    %55 = arith.addf %54, %53 : vector<1x256xf32>
    %cst_22 = arith.constant 1.000000e+00 : f32
    %56 = vector.broadcast %cst_22 : f32 to vector<1x256xf32>
    %57 = arith.divf %56, %55 : vector<1x256xf32>
    %58 = vector.shape_cast %57 : vector<1x256xf32> to vector<1x1x256xf32>
    %c0_23 = arith.constant 0 : index
    %c0_24 = arith.constant 0 : index
    %c0_25 = arith.constant 0 : index
    %59 = vector.load %arg8[%c0_23, %c0_24, %c0_25] : memref<1x1x256xf32, #tpu.memory_space<vmem>>, vector<1x1x256xf32>
    tpu.vector_store %arg8[%c0_23, %c0_24, %c0_25], %58 {strides = array<i32>} : memref<1x1x256xf32, #tpu.memory_space<vmem>>, vector<1x1x256xf32>,
    return
  }
  func.func @transform_0(%arg0: i32) -> (i32, i32) {
    %c0_i32 = arith.constant 0 : i32
    %c0_i32_0 = arith.constant 0 : i32
    return %c0_i32, %arg0 : i32, i32
  }
  func.func @transform_1(%arg0: i32) -> (i32, i32) {
    %c0_i32 = arith.constant 0 : i32
    %c0_i32_0 = arith.constant 0 : i32
    %c0_i32_1 = arith.constant 0 : i32
    return %c0_i32, %c0_i32_0 : i32, i32
  }
  func.func @transform_2(%arg0: i32) -> (i32, i32) {
    %c0_i32 = arith.constant 0 : i32
    %c0_i32_0 = arith.constant 0 : i32
    %c0_i32_1 = arith.constant 0 : i32
    return %c0_i32, %c0_i32_0 : i32, i32
  }
  func.func @transform_3(%arg0: i32) -> (i32, i32) {
    %c0_i32 = arith.constant 0 : i32
    %c0_i32_0 = arith.constant 0 : i32
    %c0_i32_1 = arith.constant 0 : i32
    return %c0_i32, %c0_i32_0 : i32, i32
  }
  func.func @transform_4(%arg0: i32) -> (i32, i32) {
    %c0_i32 = arith.constant 0 : i32
    %c0_i32_0 = arith.constant 0 : i32
    %c0_i32_1 = arith.constant 0 : i32
    return %c0_i32, %c0_i32_0 : i32, i32
  }
  func.func @transform_5(%arg0: i32) -> (i32, i32) {
    %c0_i32 = arith.constant 0 : i32
    %c0_i32_0 = arith.constant 0 : i32
    %c0_i32_1 = arith.constant 0 : i32
    return %c0_i32, %c0_i32_0 : i32, i32
  }
  func.func @transform_6(%arg0: i32) -> (i32, i32) {
    %c0_i32 = arith.constant 0 : i32
    %c0_i32_0 = arith.constant 0 : i32
    %c0_i32_1 = arith.constant 0 : i32
    return %c0_i32, %c0_i32_0 : i32, i32
  }
  func.func @transform_7(%arg0: i32) -> (i32, i32, i32) {
    %c0_i32 = arith.constant 0 : i32
    %c0_i32_0 = arith.constant 0 : i32
    %c0_i32_1 = arith.constant 0 : i32
    return %arg0, %c0_i32, %c0_i32_0 : i32, i32, i32
  }
}

</mosaic_0001>

<bundles_post_ra>
// kernel: tpu_custom_call.1
= control target key start
LH: loop header
LB: loop body
LE: loop exit
PB: predicated region body
PF: predicated region fallthrough
CT: control target
= control target key end

     0   :  { %v1422_v2 = vmov 2   ;;  %v1423_v3 = vmov 0   ;;  %v1424_v5 = vmov 1   ;;  %s2077_s0 = inlined_call_operand.vmem [shape: f32[3,256], index: 0, kind: input, shape index: {}]   ;;  %s2078_s1 = inlined_call_operand.vmem [shape: f32[128,3], index: 1, kind: input, shape index: {}]   ;;  %s2079_s2 = inlined_call_operand.vmem [shape: f32[128,128], index: 2, kind: input, shape index: {}]   ;;  %s2080_s3 = inlined_call_operand.vmem [shape: f32[64,128], index: 3, kind: input, shape index: {}]   ;;  %s2081_s4 = inlined_call_operand.vmem [shape: f32[32,64], index: 4, kind: input, shape index: {}]   ;;  %s2082_s5 = inlined_call_operand.vmem [shape: f32[1,32], index: 5, kind: input, shape index: {}]   ;;  %s2083_s6 = inlined_call_operand.vmem [shape: f32[128,8], index: 6, kind: input, shape index: {}]   ;;  %s2084_s7 = inlined_call_operand.hbm [shape: f32[1,1,256], index: 7, kind: output, shape index: {}]  }
   0x1   :  { %v58_v0 = vld [vmem:[%s2078_s1 + $0x70] sm:$0xff]  ;;  %v57_v1 = vld [vmem:[%s2078_s1 + $0x68] sm:$0xff]  ;;  %1347 = vset.pattern.permute.xlu0 %v1422_v2  ;;  %1341 = vset.pattern.permute.xlu1 %v1423_v3  ;;  %v59_v4 = vld [vmem:[%s2078_s1 + $0x78] sm:$0xff] }
   0x2   :  { %132 = vperm.xlu1 %1341, %v58_v0   ;;  %390 = vperm.xlu0 %1347, %v57_v1   ;;  %v55_v6 = vld [vmem:[%s2078_s1 + $0x58] sm:$0xff] }
   0x6   :  { %1342 = vset.pattern.permute.xlu1 %v1424_v5  ;;  %1348 = vset.pattern.permute.xlu0 %v1424_v5 }
   0x7   :  { %248 = vperm.xlu1 %1342, %v58_v0   ;;  %252 = vperm.xlu0 %1348, %v59_v4  }
   0x8   :  { %12 = vsyncpa [#allocation3], 0  ;;  %v53_v7 = vld [vmem:[%s2078_s1 + $0x48] sm:$0xff]  ;;  %v1494_v8 = vld [vmem:[%s2078_s1 + $0x38] sm:$0xff]  ;;  %v141_v42 = vlaneseq  ;;  %vm1089_vm0 = vcmask 523264   ;;  %vm1204_vm1 = vcmask 261120  }
   0x9   :  { %v1500_v9 = vld [vmem:[%s2078_s1 + $0x28] sm:$0xff]  ;;  %v56_v10 = vld [vmem:[%s2078_s1 + $0x60] sm:$0xff]  ;;  %v1510_v11 = vld [vmem:[%s2078_s1 + $0x18] sm:$0xff] }
   0xa   :  { %v1517_v12 = vld [vmem:[%s2078_s1 + $0x8] sm:$0xff]  ;;  %v1522_v13 = vld [vmem:[%s2083_s6 + $0x78] sm:$0xff]  ;;  %v42_v14 = vld [vmem:[%s2083_s6 + $0x70] sm:$0xff]  ;;  %v1678_v45 = vshrl.u32 %v141_v42, 7  ;;  %vm1311_vm2 = vcmp.lt.s32.totalorder %v141_v42, 256 }
   0xb   :  { %1343 = vset.pattern.permute.xlu1 %v1422_v2  ;;  %236 = vperm.xlu0 %1348, %v55_v6   ;;  %v54_v15 = vld [vmem:[%s2078_s1 + $0x50] sm:$0xff]  ;;  %v1539_v16 = vld [vmem:[%s2083_s6 + $0x68] sm:$0xff]  ;;  %v52_v17 = vld [vmem:[%s2078_s1 + $0x40] sm:$0xff] }
   0xc   :  { %398 = vperm.xlu1 %1343, %v59_v4   ;;  %v39_v18 = vld [vmem:[%s2083_s6 + $0x58] sm:$0xff]  ;;  %v50_v19 = vld [vmem:[%s2078_s1 + $0x30] sm:$0xff]  ;;  %v37_v20 = vld [vmem:[%s2083_s6 + $0x48] sm:$0xff]  ;;  %v257_v48 = vsub.s32 1, %v1678_v45  ;;  %v261_v49 = vsub.s32 5, %v1678_v45  ;;  %v143_v50 = vsub.s32 0, %v1678_v45 }
   0xd   :  { %v1561_v21 = vld [vmem:[%s2083_s6 + $0x60] sm:$0xff]  ;;  %v35_v23 = vld [vmem:[%s2083_s6 + $0x38] sm:$0xff]  ;;  %v1578_v24 = vld [vmem:[%s2078_s1 + $0x10] sm:$0xff]  ;;  %v147_v51 = vsub.s32 4, %v1678_v45  ;;  %v403_v53 = vsub.s32 2, %v1678_v45  ;;  %v407_v54 = vsub.s32 6, %v1678_v45 }
   0xe   :  { %v1566_v22 = vld [vmem:[%s2078_s1 + $0x20] sm:$0xff]  ;;  %v1585_v25 = vld [vmem:[%s2083_s6 + $0x28] sm:$0xff]  ;;  %v1599_v27 = vld [vmem:[%s2083_s6 + $0x18] sm:$0xff] }
   0xf   :  { %228 = vperm.xlu0 %1348, %v53_v7   ;;  %v1592_v26 = vld [vmem:[%s2078_s1] sm:$0xff]  ;;  %v1606_v28 = vld [vmem:[%s2083_s6 + $0x50] sm:$0xff]  ;;  %v1647_v34 = vld [vmem:[%s2083_s6 + $0x8] sm:$0xff] }
  0x10   :  { %1344 = vset.pattern.permute.xlu1 %v1424_v5  ;;  %v1611_v29 = vld [vmem:[%s2083_s6 + $0x10] sm:$0xff]  ;;  %v1619_v30 = vld [vmem:[%s2083_s6] sm:$0xff] }
  0x11   :  { %244 = vperm.xlu1 %1344, %v57_v1   ;;  %v1632_v31 = vld [vmem:[%s2083_s6 + $0x40] sm:$0xff]  ;;  %v1675_v44 = vld [vmem:[%s2083_s6 + $0x30] sm:$0xff] }
  0x12   :  { %v1660_v39 = vld [vmem:[%s2083_s6 + $0x20] sm:$0xff] }
  0x13   :  { %220 = vperm.xlu0 %1348, %v1494_v8   ;;  %v27_v52 = vld [vmem:[%s2077_s0] sm:$0x77] }
  0x14   :  { %v258_v57 = vrot.slane %v27_v52, %v257_v48  ;;  %v262_v58 = vrot.slane %v27_v52, %v261_v49  ;;  %v144_v59 = vrot.slane %v27_v52, %v143_v50  ;;  %v148_v60 = vrot.slane %v27_v52, %v147_v51 }
  0x15   :  { %1345 = vset.pattern.permute.xlu1 %v1422_v2  ;;  %v404_v61 = vrot.slane %v27_v52, %v403_v53  ;;  %v408_v62 = vrot.slane %v27_v52, %v407_v54 }
  0x16   :  { %394 = vperm.xlu1 %1345, %v58_v0  }
  0x17   :  { %212 = vperm.xlu0 %1348, %v1500_v9  }
  0x1a   :  { %1346 = vset.pattern.permute.xlu1 %v1424_v5 }
  0x1b   :  { %240 = vperm.xlu1 %1346, %v56_v10   ;;  %204 = vperm.xlu0 %1348, %v1510_v11  }
  0x1f   :  { %1349 = vset.pattern.permute.xlu1 %v1423_v3  ;;  %196 = vperm.xlu0 %1348, %v1517_v12  }
  0x20   :  { %560 = vperm.xlu1 %1349, %v1522_v13  }
  0x23   :  { %1375 = vset.pattern.permute.xlu0 %v1423_v3 }
  0x24   :  { %137 = vperm.xlu0 %1375, %v59_v4   ;;  %117 = vperm.xlu1 %1349, %v55_v6   ;;  %v1705_v4 = vrot.slane %v262_v58, %v257_v48 }
  0x28   :  { %127 = vperm.xlu0 %1375, %v57_v1   ;;  %1350 = vset.pattern.permute.xlu1 %v1422_v2  ;;  %v1703_v1 = vrot.slane %v258_v57, %v257_v48 }
  0x29   :  { %386 = vperm.xlu1 %1350, %v56_v10  }
  0x2c   :  { %122 = vperm.xlu0 %1375, %v56_v10  }
  0x2d   :  { %1351 = vset.pattern.permute.xlu1 %v1423_v3 }
  0x2e   :  { %555 = vperm.xlu1 %1351, %v42_v14  }
  0x30   :  { %112 = vperm.xlu0 %1375, %v54_v15  }
  0x32   :  { %1352 = vset.pattern.permute.xlu1 %v1424_v5 }
  0x33   :  { %232 = vperm.xlu1 %1352, %v54_v15  }
  0x34   :  { %550 = vperm.xlu0 %1375, %v1539_v16  }
  0x37   :  { %1353 = vset.pattern.permute.xlu1 %v1422_v2 }
  0x38   :  { %382 = vperm.xlu1 %1353, %v55_v6   ;;  %102 = vperm.xlu0 %1375, %v52_v17   ;;  %v1708_v6 = vrot.slane %v144_v59, %v143_v50 }
  0x3c   :  { %1354 = vset.pattern.permute.xlu1 %v1423_v3  ;;  %540 = vperm.xlu0 %1375, %v39_v18  }
  0x3d   :  { %107 = vperm.xlu1 %1354, %v53_v7  }
  0x40   :  { %92 = vperm.xlu0 %1375, %v50_v19  }
  0x41   :  { %1355 = vset.pattern.permute.xlu1 %v1422_v2 }
  0x42   :  { %378 = vperm.xlu1 %1355, %v54_v15  }
  0x44   :  { %530 = vperm.xlu0 %1375, %v37_v20  }
  0x46   :  { %1356 = vset.pattern.permute.xlu1 %v1423_v3 }
  0x47   :  { %545 = vperm.xlu1 %1356, %v1561_v21  }
  0x48   :  { %82 = vperm.xlu0 %1375, %v1566_v22  }
  0x4b   :  { %1357 = vset.pattern.permute.xlu1 %v1424_v5 }
  0x4c   :  { %224 = vperm.xlu1 %1357, %v52_v17   ;;  %520 = vperm.xlu0 %1375, %v35_v23  }
  0x50   :  { %1358 = vset.pattern.permute.xlu1 %v1422_v2  ;;  %72 = vperm.xlu0 %1375, %v1578_v24  }
  0x51   :  { %374 = vperm.xlu1 %1358, %v53_v7   ;;  %v1710_v7 = vrot.slane %v148_v60, %v143_v50 }
  0x54   :  { %510 = vperm.xlu0 %1375, %v1585_v25  }
  0x55   :  { %1359 = vset.pattern.permute.xlu1 %v1423_v3 }
  0x56   :  { %97 = vperm.xlu1 %1359, %v1494_v8  }
  0x58   :  { %62 = vperm.xlu0 %1375, %v1592_v26  }
  0x5a   :  { %1360 = vset.pattern.permute.xlu1 %v1422_v2 }
  0x5b   :  { %370 = vperm.xlu1 %1360, %v52_v17  }
  0x5c   :  { %500 = vperm.xlu0 %1375, %v1599_v27  }
  0x5f   :  { %1361 = vset.pattern.permute.xlu1 %v1423_v3 }
  0x60   :  { %535 = vperm.xlu1 %1361, %v1606_v28   ;;  %495 = vperm.xlu0 %1375, %v1611_v29  }
  0x64   :  { %1362 = vset.pattern.permute.xlu1 %v1424_v5  ;;  %485 = vperm.xlu0 %1375, %v1619_v30  }
  0x65   :  { %216 = vperm.xlu1 %1362, %v50_v19  }
  0x68   :  { %1382 = vset.pattern.permute.xlu0 %v1424_v5 }
  0x69   :  { %1363 = vset.pattern.permute.xlu1 %v1422_v2  ;;  %700 = vperm.xlu0 %1382, %v42_v14  }
  0x6a   :  { %366 = vperm.xlu1 %1363, %v1494_v8   ;;  %v1712_v8 = vrot.slane %v404_v61, %v403_v53 }
  0x6d   :  { %688 = vperm.xlu0 %1382, %v39_v18  }
  0x6e   :  { %1364 = vset.pattern.permute.xlu1 %v1423_v3 }
  0x6f   :  { %87 = vperm.xlu1 %1364, %v1500_v9  }
  0x71   :  { %680 = vperm.xlu0 %1382, %v37_v20  }
  0x73   :  { %1365 = vset.pattern.permute.xlu1 %v1422_v2 }
  0x74   :  { %362 = vperm.xlu1 %1365, %v50_v19  }
  0x75   :  { %672 = vperm.xlu0 %1382, %v35_v23  }
  0x78   :  { %1366 = vset.pattern.permute.xlu1 %v1423_v3 }
  0x79   :  { %525 = vperm.xlu1 %1366, %v1632_v31   ;;  %664 = vperm.xlu0 %1382, %v1585_v25  }
  0x7d   :  { %v1637_v32 = vpop.permute.xlu1 %132  ;;  %1367 = vset.pattern.permute.xlu1 %v1424_v5  ;;  %v1640_v33 = vpop.permute.xlu0 %390  ;;  %656 = vperm.xlu0 %1382, %v1599_v27  }
  0x7e   :  { %208 = vperm.xlu1 %1367, %v1566_v22   ;;  %v187_v49 = vmul.f32 %v1708_v6, %v1637_v32  ;;  %v188_v50 = vmul.f32 %v1710_v7, %v1637_v32 }
  0x81   :  { %648 = vperm.xlu0 %1382, %v1647_v34  }
  0x82   :  { %v249_v35 = vpop.permute.xlu1 %248  ;;  %1368 = vset.pattern.permute.xlu1 %v1422_v2  ;;  %v253_v36 = vpop.permute.xlu0 %252 }
  0x83   :  { %358 = vperm.xlu1 %1368, %v1500_v9   ;;  %v1714_v9 = vrot.slane %v408_v62, %v403_v53  ;;  %v303_v10 = vmul.f32 %v1703_v1, %v253_v36  ;;  %v304_v14 = vmul.f32 %v1705_v4, %v253_v36  ;;  %v302_v20 = vmul.f32 %v1705_v4, %v249_v35 }
  0x85   :  { %1383 = vset.pattern.permute.xlu0 %v1422_v2  ;;  %v334_v59 = vadd.f32 %v302_v20, %v188_v50  ;;  %v446_v20 = vmul.f32 %v1714_v9, %v1640_v33 }
  0x86   :  { %v1653_v37 = vpop.permute.xlu0 %236  ;;  %937 = vperm.xlu0 %1383, %v35_v23  }
  0x87   :  { %v399_v38 = vpop.permute.xlu1 %398  ;;  %1369 = vset.pattern.permute.xlu1 %v1423_v3 }
  0x88   :  { %77 = vperm.xlu1 %1369, %v1510_v11   ;;  %v450_v23 = vmul.f32 %v1714_v9, %v399_v38 }
  0x8a   :  { %v1662_v40 = vpop.permute.xlu0 %228  ;;  %925 = vperm.xlu0 %1383, %v1660_v39  }
  0x8c   :  { %v1665_v41 = vpop.permute.xlu1 %244  ;;  %1370 = vset.pattern.permute.xlu1 %v1422_v2 }
  0x8d   :  { %354 = vperm.xlu1 %1370, %v1566_v22   ;;  %v449_v22 = vmul.f32 %v1712_v8, %v399_v38  ;;  %v299_v62 = vmul.f32 %v1703_v1, %v1665_v41 }
  0x8e   :  { %v1669_v43 = vpop.permute.xlu0 %220  ;;  %917 = vperm.xlu0 %1383, %v1611_v29  }
  0x91   :  { %v395_v46 = vpop.permute.xlu1 %394  ;;  %1371 = vset.pattern.permute.xlu1 %v1423_v3 }
  0x92   :  { %515 = vperm.xlu1 %1371, %v1675_v44   ;;  %v1682_v47 = vpop.permute.xlu0 %212  ;;  %909 = vperm.xlu0 %1383, %v1619_v30   ;;  %v447_v52 = vmul.f32 %v1712_v8, %v395_v46  ;;  %v448_v53 = vmul.f32 %v1714_v9, %v395_v46  ;;  %v300_v46 = vmul.f32 %v1705_v4, %v1665_v41 }
  0x96   :  { %v1694_v55 = vpop.permute.xlu1 %240  ;;  %1372 = vset.pattern.permute.xlu1 %v1424_v5  ;;  %v1697_v56 = vpop.permute.xlu0 %204 }
  0x97   :  { %200 = vperm.xlu1 %1372, %v1578_v24  }
  0x9a   :  { %v1700_v63 = vpop.permute.xlu0 %196 }
  0x9b   :  { %v561_v0 = vpop.permute.xlu1 %560  ;;  %1373 = vset.pattern.permute.xlu1 %v1422_v2 }
  0x9c   :  { %350 = vperm.xlu1 %1373, %v1510_v11   ;;  %v301_v11 = vmul.f32 %v1703_v1, %v249_v35 }
  0x9e   :  { %v333_v58 = vadd.f32 %v301_v11, %v187_v49  ;;  %v445_v11 = vmul.f32 %v1712_v8, %v1640_v33 }
  0x9f   :  { %v138_v15 = vpop.permute.xlu0 %137  ;;  %v1718_v17 = vpop.permute.xlu1 %117 }
  0xa0   :  { %v189_v18 = vmul.f32 %v1708_v6, %v138_v15  ;;  %v190_v19 = vmul.f32 %v1710_v7, %v138_v15  ;;  %1374 = vset.pattern.permute.xlu1 %v1423_v3  ;;  %v480_v15 = vadd.f32 %v448_v53, %v334_v59 }
  0xa1   :  { %67 = vperm.xlu1 %1374, %v1517_v12  }
  0xa2   :  { %v335_v36 = vadd.f32 %v303_v10, %v189_v18  ;;  %v336_v48 = vadd.f32 %v304_v14, %v190_v19  ;;  %v479_v14 = vadd.f32 %v447_v52, %v333_v58 }
  0xa3   :  { %v128_v51 = vpop.permute.xlu0 %127 }
  0xa4   :  { %v1734_v35 = vpop.permute.xlu1 %386  ;;  %v482_v54 = vadd.f32 %v450_v23, %v336_v48  ;;  %v481_v57 = vadd.f32 %v449_v22, %v335_v36  ;;  %v185_v38 = vmul.f32 %v1708_v6, %v128_v51  ;;  %v186_v60 = vmul.f32 %v1710_v7, %v128_v51 }
  0xa5   :  { %1376 = vset.pattern.permute.xlu1 %v1422_v2 }
  0xa6   :  { %346 = vperm.xlu1 %1376, %v1578_v24   ;;  %v594_v32 = vadd.f32 %v561_v0, %v482_v54  ;;  %v593_v61 = vadd.f32 %v561_v0, %v481_v57  ;;  %v331_v22 = vadd.f32 %v299_v62, %v185_v38  ;;  %v332_v0 = vadd.f32 %v300_v46, %v186_v60 }
  0xa7   :  { %v123_v10 = vpop.permute.xlu0 %122  ;;  %v296_v60 = vmul.f32 %v1705_v4, %v1653_v37  ;;  %v295_v46 = vmul.f32 %v1703_v1, %v1653_v37 }
  0xa8   :  { %v626_v18 = vmax.f32 %v594_v32, 0.0  ;;  %v625_v19 = vmax.f32 %v593_v61, 0.0  ;;  %v477_v51 = vadd.f32 %v445_v11, %v331_v22  ;;  %v478_v33 = vadd.f32 %v446_v20, %v332_v0 }
  0xa9   :  { %v556_v24 = vpop.permute.xlu1 %555  ;;  %v182_v32 = vmul.f32 %v1710_v7, %v1718_v17  ;;  %v183_v61 = vmul.f32 %v1708_v6, %v123_v10  ;;  %v184_v62 = vmul.f32 %v1710_v7, %v123_v10  ;;  %v444_v22 = vmul.f32 %v1714_v9, %v1734_v35 }
  0xaa   :  { %v591_v23 = vadd.f32 %v556_v24, %v479_v14  ;;  %v592_v36 = vadd.f32 %v556_v24, %v480_v15  ;;  %1377 = vset.pattern.permute.xlu1 %v1423_v3  ;;  %707 = vmatprep.subr.mxu0 %v626_v18  ;;  %v297_v15 = vmul.f32 %v1703_v1, %v1694_v55 }
  0xab   :  { %v1749_v41 = vpop.permute.xlu0 %112  ;;  %505 = vperm.xlu1 %1377, %v1660_v39   ;;  %708 = vmatpush1.msra.mxu0 %v625_v19  ;;  %v298_v18 = vmul.f32 %v1705_v4, %v1694_v55  ;;  %v328_v11 = vadd.f32 %v296_v60, %v182_v32  ;;  %v292_v60 = vmul.f32 %v1705_v4, %v1662_v40 }
  0xac   :  { %v623_v48 = vmax.f32 %v591_v23, 0.0  ;;  %v624_v49 = vmax.f32 %v592_v36, 0.0 }
  0xad   :  { %v330_v20 = vadd.f32 %v298_v18, %v184_v62 }
  0xae   :  { %v1752_v50 = vpop.permute.xlu1 %232  ;;  %709 = vmatprep.subr.mxu0 %v624_v49 }
  0xaf   :  { %v551_v52 = vpop.permute.xlu0 %550  ;;  %1378 = vset.pattern.permute.xlu1 %v1424_v5  ;;  %710 = vmatpush1.msra.mxu0 %v623_v48  ;;  %v476_v48 = vadd.f32 %v444_v22, %v330_v20 }
  0xb0   :  { %v589_v53 = vadd.f32 %v551_v52, %v477_v51  ;;  %v590_v54 = vadd.f32 %v551_v52, %v478_v33  ;;  %192 = vperm.xlu1 %1378, %v1592_v26   ;;  %v1425_v51 = vmov 0.0  }
  0xb1   :  { %771 = vmatprep.mubr.f32.mxu0 %v1425_v51  ;;  %1004 = vmatprep.mubr.f32.mxu1 %v1425_v51 }
  0xb2   :  { %v621_v57 = vmax.f32 %v589_v53, 0.0  ;;  %v622_v58 = vmax.f32 %v590_v54, 0.0 }
  0xb3   :  { %v383_v59 = vpop.permute.xlu1 %382  ;;  %v1769_v14 = vpop.permute.xlu0 %102 }
  0xb4   :  { %1379 = vset.pattern.permute.xlu1 %v1422_v2  ;;  %711 = vmatprep.subr.mxu0 %v622_v58  ;;  %v442_v19 = vmul.f32 %v1714_v9, %v383_v59  ;;  %v441_v10 = vmul.f32 %v1712_v8, %v383_v59 }
  0xb5   :  { %342 = vperm.xlu1 %1379, %v1517_v12   ;;  %712 = vmatpush1.msra.mxu0 %v621_v57  ;;  %v181_v12 = vmul.f32 %v1708_v6, %v1718_v17  ;;  %v443_v17 = vmul.f32 %v1712_v8, %v1734_v35 }
  0xb6   :  { %v474_v55 = vadd.f32 %v442_v19, %v328_v11 }
  0xb7   :  { %v327_v37 = vadd.f32 %v295_v46, %v181_v12  ;;  %v541_v0 = vpop.permute.xlu0 %540  ;;  %v294_v12 = vmul.f32 %v1705_v4, %v1752_v50 }
  0xb8   :  { %v108_v38 = vpop.permute.xlu1 %107 }
  0xb9   :  { %338 = vperm.xlu1 %1379, %v1592_v26   ;;  %v329_v26 = vadd.f32 %v297_v15, %v183_v61  ;;  %v473_v23 = vadd.f32 %v441_v10, %v327_v37  ;;  %v178_v32 = vmul.f32 %v1710_v7, %v108_v38  ;;  %v291_v61 = vmul.f32 %v1703_v1, %v1662_v40 }
  0xba   :  { %v177_v62 = vmul.f32 %v1708_v6, %v108_v38 }
  0xbb   :  { %v475_v36 = vadd.f32 %v443_v17, %v329_v26  ;;  %v585_v53 = vadd.f32 %v541_v0, %v473_v23  ;;  %v1800_v46 = vpop.permute.xlu0 %92  ;;  %v324_v18 = vadd.f32 %v292_v60, %v178_v32 }
  0xbd   :  { %v379_v24 = vpop.permute.xlu1 %378  ;;  %1380 = vset.pattern.permute.xlu1 %v1423_v3  ;;  %v586_v3 = vadd.f32 %v541_v0, %v474_v55  ;;  %v617_v59 = vmax.f32 %v585_v53, 0.0  ;;  %v288_v53 = vmul.f32 %v1705_v4, %v1669_v43 }
  0xbe   :  { %490 = vperm.xlu1 %1380, %v1647_v34   ;;  %v439_v38 = vmul.f32 %v1712_v8, %v379_v24  ;;  %v440_v19 = vmul.f32 %v1714_v9, %v379_v24 }
  0xbf   :  { %v618_v57 = vmax.f32 %v586_v3, 0.0  ;;  %v531_v20 = vpop.permute.xlu0 %530 }
  0xc2   :  { %v546_v49 = vpop.permute.xlu1 %545  ;;  %1381 = vset.pattern.permute.xlu1 %v1424_v5 }
  0xc3   :  { %v587_v33 = vadd.f32 %v546_v49, %v475_v36  ;;  %v588_v52 = vadd.f32 %v546_v49, %v476_v48  ;;  %704 = vperm.xlu1 %1381, %v1522_v13  }
  0xc5   :  { %v619_v35 = vmax.f32 %v587_v33, 0.0  ;;  %v620_v54 = vmax.f32 %v588_v52, 0.0 }
  0xc7   :  { %v1787_v58 = vpop.permute.xlu1 %224  ;;  %713 = vmatprep.subr.mxu0 %v620_v54  ;;  %696 = vperm.xlu1 %1381, %v1539_v16   ;;  %v179_v16 = vmul.f32 %v1708_v6, %v1749_v41  ;;  %v175_v54 = vmul.f32 %v1708_v6, %v1769_v14 }
  0xc8   :  { %714 = vmatpush1.msra.mxu0 %v619_v35  ;;  %v287_v35 = vmul.f32 %v1703_v1, %v1669_v43 }
  0xc9   :  { %715 = vmatprep.subr.mxu0 %v618_v57 }
  0xca   :  { %716 = vmatpush1.msra.mxu0 %v617_v59 }
  0xcb   :  { %692 = vperm.xlu1 %1381, %v1561_v21   ;;  %v180_v21 = vmul.f32 %v1710_v7, %v1749_v41 }
  0xcc   :  { %v375_v5 = vpop.permute.xlu1 %374 }
  0xcd   :  { %v438_v40 = vmul.f32 %v1714_v9, %v375_v5  ;;  %v437_v15 = vmul.f32 %v1712_v8, %v375_v5  ;;  %v326_v11 = vadd.f32 %v294_v12, %v180_v21  ;;  %v1835_v5 = vpop.permute.xlu0 %82 }
  0xcf   :  { %684 = vperm.xlu1 %1381, %v1606_v28   ;;  %v293_v28 = vmul.f32 %v1703_v1, %v1752_v50  ;;  %v470_v26 = vadd.f32 %v438_v40, %v324_v18  ;;  %v472_v50 = vadd.f32 %v440_v19, %v326_v11 }
  0xd1   :  { %v98_v13 = vpop.permute.xlu1 %97  ;;  %v325_v41 = vadd.f32 %v293_v28, %v179_v16  ;;  %v582_v55 = vadd.f32 %v531_v20, %v470_v26  ;;  %v521_v12 = vpop.permute.xlu0 %520 }
  0xd2   :  { %v173_v57 = vmul.f32 %v1708_v6, %v98_v13 }
  0xd3   :  { %676 = vperm.xlu1 %1381, %v1632_v31   ;;  %v323_v31 = vadd.f32 %v291_v61, %v177_v62  ;;  %v471_v17 = vadd.f32 %v439_v38, %v325_v41  ;;  %v614_v49 = vmax.f32 %v582_v55, 0.0 }
  0xd4   :  { %v319_v61 = vadd.f32 %v287_v35, %v173_v57 }
  0xd5   :  { %v469_v37 = vadd.f32 %v437_v15, %v323_v31 }
  0xd6   :  { %v371_v10 = vpop.permute.xlu1 %370 }
  0xd7   :  { %668 = vperm.xlu1 %1381, %v1675_v44   ;;  %v581_v36 = vadd.f32 %v531_v20, %v469_v37 }
  0xd9   :  { %v613_v33 = vmax.f32 %v581_v36, 0.0  ;;  %v283_v36 = vmul.f32 %v1703_v1, %v1682_v47 }
  0xdb   :  { %v536_v22 = vpop.permute.xlu1 %535  ;;  %660 = vperm.xlu1 %1381, %v1660_v39  }
  0xdc   :  { %v583_v0 = vadd.f32 %v536_v22, %v471_v17  ;;  %v584_v23 = vadd.f32 %v536_v22, %v472_v50  ;;  %v171_v17 = vmul.f32 %v1708_v6, %v1800_v46  ;;  %v172_v22 = vmul.f32 %v1710_v7, %v1800_v46 }
  0xde   :  { %v615_v48 = vmax.f32 %v583_v0, 0.0  ;;  %v616_v24 = vmax.f32 %v584_v23, 0.0 }
  0xdf   :  { %652 = vperm.xlu1 %1381, %v1611_v29   ;;  %v174_v29 = vmul.f32 %v1710_v7, %v98_v13  ;;  %v435_v13 = vmul.f32 %v1712_v8, %v371_v10 }
  0xe0   :  { %v217_v3 = vpop.permute.xlu1 %216  ;;  %717 = vmatprep.subr.mxu0 %v616_v24 }
  0xe1   :  { %718 = vmatpush1.msra.mxu0 %v615_v48  ;;  %v320_v60 = vadd.f32 %v288_v53, %v174_v29  ;;  %v285_v55 = vmul.f32 %v1703_v1, %v217_v3  ;;  %v286_v0 = vmul.f32 %v1705_v4, %v217_v3  ;;  %v73_v48 = vpop.permute.xlu0 %72 }
  0xe2   :  { %719 = vmatprep.subr.mxu0 %v614_v49 }
  0xe3   :  { %720 = vmatpush1.msra.mxu0 %v613_v33  ;;  %644 = vperm.xlu1 %1381, %v1619_v30   ;;  %v289_v30 = vmul.f32 %v1703_v1, %v1787_v58  ;;  %v317_v46 = vadd.f32 %v285_v55, %v171_v17  ;;  %v318_v29 = vadd.f32 %v286_v0, %v172_v22 }
  0xe5   :  { %v367_v52 = vpop.permute.xlu1 %366 }
  0xe6   :  { %v434_v59 = vmul.f32 %v1714_v9, %v367_v52  ;;  %v433_v43 = vmul.f32 %v1712_v8, %v367_v52 }
  0xe7   :  { %1384 = vset.pattern.permute.xlu1 %v1422_v2  ;;  %v176_v2 = vmul.f32 %v1710_v7, %v1769_v14  ;;  %v321_v14 = vadd.f32 %v289_v30, %v175_v54 }
  0xe8   :  { %933 = vperm.xlu1 %1384, %v1675_v44   ;;  %v290_v44 = vmul.f32 %v1705_v4, %v1787_v58  ;;  %v466_v62 = vadd.f32 %v434_v59, %v320_v60  ;;  %v465_v21 = vadd.f32 %v433_v43, %v319_v61 }
  0xe9   :  { %v467_v58 = vadd.f32 %v435_v13, %v321_v14 }
  0xea   :  { %v88_v39 = vpop.permute.xlu1 %87  ;;  %v322_v16 = vadd.f32 %v290_v44, %v176_v2  ;;  %v578_v38 = vadd.f32 %v521_v12, %v466_v62  ;;  %v577_v19 = vadd.f32 %v521_v12, %v465_v21  ;;  %v511_v2 = vpop.permute.xlu0 %510  ;;  %v168_v12 = vmul.f32 %v1710_v7, %v1835_v5 }
  0xeb   :  { %v170_v37 = vmul.f32 %v1710_v7, %v88_v39  ;;  %v169_v50 = vmul.f32 %v1708_v6, %v88_v39 }
  0xec   :  { %929 = vperm.xlu1 %1384, %v1585_v25   ;;  %v436_v25 = vmul.f32 %v1714_v9, %v371_v10  ;;  %v610_v11 = vmax.f32 %v578_v38, 0.0 }
  0xed   :  { %v315_v53 = vadd.f32 %v283_v36, %v169_v50 }
  0xee   :  { %v468_v28 = vadd.f32 %v436_v25, %v322_v16  ;;  %v63_v16 = vpop.permute.xlu0 %62 }
  0xef   :  { %v363_v32 = vpop.permute.xlu1 %362 }
  0xf0   :  { %921 = vperm.xlu1 %1384, %v1599_v27   ;;  %v609_v27 = vmax.f32 %v577_v19, 0.0  ;;  %v431_v33 = vmul.f32 %v1712_v8, %v363_v32  ;;  %v432_v52 = vmul.f32 %v1714_v9, %v363_v32 }
  0xf2   :  { %v463_v3 = vadd.f32 %v431_v33, %v317_v46  ;;  %v464_v57 = vadd.f32 %v432_v52, %v318_v29 }
  0xf4   :  { %v526_v40 = vpop.permute.xlu1 %525  ;;  %913 = vperm.xlu1 %1384, %v1647_v34   ;;  %v284_v34 = vmul.f32 %v1705_v4, %v1682_v47 }
  0xf5   :  { %v579_v15 = vadd.f32 %v526_v40, %v467_v58  ;;  %v580_v18 = vadd.f32 %v526_v40, %v468_v28  ;;  %v280_v58 = vmul.f32 %v1705_v4, %v1697_v56  ;;  %v167_v28 = vmul.f32 %v1708_v6, %v1835_v5 }
  0xf6   :  { %v316_v49 = vadd.f32 %v284_v34, %v170_v37  ;;  %v501_v34 = vpop.permute.xlu0 %500 }
  0xf7   :  { %v611_v31 = vmax.f32 %v579_v15, 0.0  ;;  %v612_v10 = vmax.f32 %v580_v18, 0.0 }
  0xf9   :  { %v209_v41 = vpop.permute.xlu1 %208  ;;  %721 = vmatprep.subr.mxu0 %v612_v10 }
  0xfa   :  { %722 = vmatpush1.msra.mxu0 %v611_v31  ;;  %v281_v15 = vmul.f32 %v1703_v1, %v209_v41  ;;  %v282_v18 = vmul.f32 %v1705_v4, %v209_v41  ;;  %v279_v31 = vmul.f32 %v1703_v1, %v1697_v56  ;;  %v163_v41 = vmul.f32 %v1708_v6, %v73_v48 }
  0xfb   :  { %723 = vmatprep.subr.mxu0 %v610_v11 }
  0xfc   :  { %724 = vmatpush1.msra.mxu0 %v609_v27  ;;  %v164_v27 = vmul.f32 %v1710_v7, %v73_v48  ;;  %v313_v22 = vadd.f32 %v281_v15, %v167_v28  ;;  %v314_v55 = vadd.f32 %v282_v18, %v168_v12  ;;  %v275_v28 = vmul.f32 %v1703_v1, %v1700_v63 }
  0xfd   :  { %v276_v12 = vmul.f32 %v1705_v4, %v1700_v63 }
  0xfe   :  { %v359_v26 = vpop.permute.xlu1 %358 }
  0xff   :  { %v430_v23 = vmul.f32 %v1714_v9, %v359_v26  ;;  %v429_v24 = vmul.f32 %v1712_v8, %v359_v26 }
 0x101   :  { %v462_v35 = vadd.f32 %v430_v23, %v316_v49  ;;  %v461_v54 = vadd.f32 %v429_v24, %v315_v53 }
 0x103   :  { %v78_v20 = vpop.permute.xlu1 %77  ;;  %v574_v59 = vadd.f32 %v511_v2, %v462_v35  ;;  %v573_v43 = vadd.f32 %v511_v2, %v461_v54  ;;  %v496_v35 = vpop.permute.xlu0 %495 }
 0x104   :  { %v166_v21 = vmul.f32 %v1710_v7, %v78_v20  ;;  %v165_v40 = vmul.f32 %v1708_v6, %v78_v20 }
 0x105   :  { %v606_v61 = vmax.f32 %v574_v59, 0.0  ;;  %v605_v32 = vmax.f32 %v573_v43, 0.0 }
 0x106   :  { %v312_v5 = vadd.f32 %v280_v58, %v166_v21  ;;  %v311_v17 = vadd.f32 %v279_v31, %v165_v40  ;;  %v159_v21 = vmul.f32 %v1708_v6, %v63_v16  ;;  %v160_v58 = vmul.f32 %v1710_v7, %v63_v16 }
 0x108   :  { %v355_v39 = vpop.permute.xlu1 %354 }
 0x109   :  { %v427_v26 = vmul.f32 %v1712_v8, %v355_v39  ;;  %v428_v20 = vmul.f32 %v1714_v9, %v355_v39 }
 0x10b   :  { %v459_v33 = vadd.f32 %v427_v26, %v313_v22  ;;  %v460_v52 = vadd.f32 %v428_v20, %v314_v55  ;;  %v631_v22 = vld [vmem:[%s2079_s2 + $0x20] sm:$0xff]  ;;  %v632_v55 = vld [vmem:[%s2079_s2 + $0x28] sm:$0xff] }
 0x10d   :  { %v516_v30 = vpop.permute.xlu1 %515 }
 0x10e   :  { %v575_v44 = vadd.f32 %v516_v30, %v463_v3  ;;  %v576_v47 = vadd.f32 %v516_v30, %v464_v57 }
 0x110   :  { %v607_v60 = vmax.f32 %v575_v44, 0.0  ;;  %v608_v13 = vmax.f32 %v576_v47, 0.0 }
 0x112   :  { %v201_v25 = vpop.permute.xlu1 %200  ;;  %725 = vmatprep.subr.mxu0 %v608_v13 }
 0x113   :  { %726 = vmatpush1.msra.mxu0 %v607_v60  ;;  %v278_v38 = vmul.f32 %v1705_v4, %v201_v25  ;;  %v277_v10 = vmul.f32 %v1703_v1, %v201_v25 }
 0x114   :  { %727 = vmatprep.subr.mxu0 %v606_v61 }
 0x115   :  { %728 = vmatpush1.msra.mxu0 %v605_v32  ;;  %v310_v0 = vadd.f32 %v278_v38, %v164_v27  ;;  %v309_v36 = vadd.f32 %v277_v10, %v163_v41  ;;  %v486_v27 = vpop.permute.xlu0 %485 }
 0x117   :  { %v351_v14 = vpop.permute.xlu1 %350 }
 0x118   :  { %v426_v19 = vmul.f32 %v1714_v9, %v351_v14  ;;  %v425_v11 = vmul.f32 %v1712_v8, %v351_v14 }
 0x11a   :  { %v458_v23 = vadd.f32 %v426_v19, %v312_v5  ;;  %v457_v24 = vadd.f32 %v425_v11, %v311_v17  ;;  %v628_v17 = vld [vmem:[%s2079_s2 + $0x8] sm:$0xff] }
 0x11c   :  { %v68_v62 = vpop.permute.xlu1 %67  ;;  %v570_v48 = vadd.f32 %v501_v34, %v458_v23  ;;  %v569_v54 = vadd.f32 %v501_v34, %v457_v24  ;;  %v634_v23 = vld [vmem:[%s2079_s2 + $0x38] sm:$0xff]  ;;  %v636_v24 = vld [vmem:[%s2079_s2 + $0x48] sm:$0xff] }
 0x11d   :  { %v161_v32 = vmul.f32 %v1708_v6, %v68_v62  ;;  %v162_v14 = vmul.f32 %v1710_v7, %v68_v62 }
 0x11e   :  { %v602_v47 = vmax.f32 %v570_v48, 0.0  ;;  %v601_v59 = vmax.f32 %v569_v54, 0.0 }
 0x11f   :  { %v307_v6 = vadd.f32 %v275_v28, %v161_v32  ;;  %v308_v10 = vadd.f32 %v276_v12, %v162_v14 }
 0x121   :  { %v347_v37 = vpop.permute.xlu1 %346 }
 0x122   :  { %v423_v50 = vmul.f32 %v1712_v8, %v347_v37  ;;  %v424_v56 = vmul.f32 %v1714_v9, %v347_v37 }
 0x124   :  { %v456_v49 = vadd.f32 %v424_v56, %v310_v0  ;;  %v455_v53 = vadd.f32 %v423_v50, %v309_v36  ;;  %v629_v50 = vld [vmem:[%s2079_s2 + $0x10] sm:$0xff]  ;;  %v630_v56 = vld [vmem:[%s2079_s2 + $0x18] sm:$0xff]  ;;  %v635_v36 = vld [vmem:[%s2079_s2 + $0x40] sm:$0xff] }
 0x125   :  { %v633_v0 = vld [vmem:[%s2079_s2 + $0x30] sm:$0xff] }
 0x126   :  { %v506_v39 = vpop.permute.xlu1 %505  ;;  %v568_v2 = vadd.f32 %v496_v35, %v456_v49  ;;  %v567_v30 = vadd.f32 %v496_v35, %v455_v53  ;;  %v637_v49 = vld [vmem:[%s2079_s2 + $0x50] sm:$0xff]  ;;  %v640_v53 = vld [vmem:[%s2079_s2 + $0x68] sm:$0xff] }
 0x127   :  { %v571_v46 = vadd.f32 %v506_v39, %v459_v33  ;;  %v572_v29 = vadd.f32 %v506_v39, %v460_v52  ;;  %v638_v33 = vld [vmem:[%s2079_s2 + $0x58] sm:$0xff]  ;;  %v639_v52 = vld [vmem:[%s2079_s2 + $0x60] sm:$0xff]  ;;  %v641_v39 = vld [vmem:[%s2079_s2 + $0x70] sm:$0xff] }
 0x128   :  { %v600_v43 = vmax.f32 %v568_v2, 0.0  ;;  %v599_v60 = vmax.f32 %v567_v30, 0.0 }
 0x129   :  { %v603_v3 = vmax.f32 %v571_v46, 0.0  ;;  %v604_v57 = vmax.f32 %v572_v29, 0.0  ;;  %v642_v46 = vld [vmem:[%s2079_s2 + $0x78] sm:$0xff] }
 0x12b   :  { %v193_v44 = vpop.permute.xlu1 %192  ;;  %729 = vmatprep.subr.mxu0 %v604_v57 }
 0x12c   :  { %730 = vmatpush1.msra.mxu0 %v603_v3  ;;  %v273_v25 = vmul.f32 %v1703_v1, %v193_v44  ;;  %v274_v61 = vmul.f32 %v1705_v4, %v193_v44 }
 0x12d   :  { %731 = vmatprep.subr.mxu0 %v602_v47 }
 0x12e   :  { %732 = vmatpush1.msra.mxu0 %v601_v59  ;;  %v305_v38 = vadd.f32 %v273_v25, %v159_v21  ;;  %v306_v19 = vadd.f32 %v274_v61, %v160_v58 }
 0x12f   :  { %733 = vmatprep.subr.mxu0 %v600_v43 }
 0x130   :  { %v343_v13 = vpop.permute.xlu1 %342  ;;  %734 = vmatpush1.msra.mxu0 %v599_v60 }
 0x131   :  { %v421_v40 = vmul.f32 %v1712_v8, %v343_v13  ;;  %v422_v15 = vmul.f32 %v1714_v9, %v343_v13 }
 0x133   :  { %v453_v11 = vadd.f32 %v421_v40, %v307_v6  ;;  %v454_v1 = vadd.f32 %v422_v15, %v308_v10 }
 0x134   :  { %v339_v18 = vpop.permute.xlu1 %338 }
 0x135   :  { %v419_v31 = vmul.f32 %v1712_v8, %v339_v18  ;;  %v420_v62 = vmul.f32 %v1714_v9, %v339_v18  ;;  %v627_v9 = vld [vmem:[%s2079_s2] sm:$0xff] }
 0x137   :  { %v451_v7 = vadd.f32 %v419_v31, %v305_v38  ;;  %v452_v16 = vadd.f32 %v420_v62, %v306_v19  ;;  %v701_v62 = vpop.permute.xlu0 %700 }
 0x139   :  { %v491_v5 = vpop.permute.xlu1 %490  ;;  %v564_v26 = vadd.f32 %v486_v27, %v452_v16  ;;  %v563_v20 = vadd.f32 %v486_v27, %v451_v7 }
 0x13a   :  { %v565_v63 = vadd.f32 %v491_v5, %v453_v11  ;;  %v566_v4 = vadd.f32 %v491_v5, %v454_v1 }
 0x13b   :  { %v596_v34 = vmax.f32 %v564_v26, 0.0  ;;  %v595_v8 = vmax.f32 %v563_v20, 0.0  ;;  %v689_v11 = vpop.permute.xlu0 %688 }
 0x13c   :  { %v597_v37 = vmax.f32 %v565_v63, 0.0  ;;  %v598_v41 = vmax.f32 %v566_v4, 0.0 }
 0x13e   :  { %735 = vmatprep.subr.mxu0 %v598_v41  ;;  %v705_v12 = vpop.permute.xlu1 %704 }
 0x13f   :  { %736 = vmatpush1.msra.mxu0 %v597_v37  ;;  %v681_v26 = vpop.permute.xlu0 %680 }
 0x140   :  { %737 = vmatprep.subr.mxu0 %v596_v34 }
 0x141   :  { %738 = vmatpush1.msra.mxu0 %v595_v8 }
 0x142   :  { %772 = vmatmul.mubr.f32.vlgmr.msra.gmra.mxu0 %v627_v9  ;;  %v697_v38 = vpop.permute.xlu1 %696 }
 0x143   :  { %777 = vmatprep.mubr.f32.mxu0 %v1425_v51 }
 0x146   :  { %778 = vmatmul.mubr.f32.gmra.mxu0 %v628_v17  ;;  %v693_v10 = vpop.permute.xlu1 %692 }
 0x147   :  { %783 = vmatprep.mubr.f32.mxu0 %v1425_v51 }
 0x14a   :  { %784 = vmatmul.mubr.f32.gmra.mxu0 %v629_v50  ;;  %v685_v27 = vpop.permute.xlu1 %684 }
 0x14b   :  { %789 = vmatprep.mubr.f32.mxu0 %v1425_v51 }
 0x14e   :  { %790 = vmatmul.mubr.f32.gmra.mxu0 %v630_v56  ;;  %v677_v34 = vpop.permute.xlu1 %676 }
 0x14f   :  { %795 = vmatprep.mubr.f32.mxu0 %v1425_v51 }
 0x152   :  { %796 = vmatmul.mubr.f32.gmra.mxu0 %v631_v22 }
 0x153   :  { %801 = vmatprep.mubr.f32.mxu0 %v1425_v51 }
 0x156   :  { %802 = vmatmul.mubr.f32.gmra.mxu0 %v632_v55 }
 0x157   :  { %807 = vmatprep.mubr.f32.mxu0 %v1425_v51 }
 0x15a   :  { %808 = vmatmul.mubr.f32.gmra.mxu0 %v633_v0 }
 0x15b   :  { %813 = vmatprep.mubr.f32.mxu0 %v1425_v51 }
 0x15e   :  { %814 = vmatmul.mubr.f32.gmra.mxu0 %v634_v23  ;;  %v673_v23 = vpop.permute.xlu0 %672 }
 0x15f   :  { %819 = vmatprep.mubr.f32.mxu0 %v1425_v51 }
 0x162   :  { %820 = vmatmul.mubr.f32.gmra.mxu0 %v635_v36 }
 0x163   :  { %825 = vmatprep.mubr.f32.mxu0 %v1425_v51 }
 0x166   :  { %826 = vmatmul.mubr.f32.gmra.mxu0 %v636_v24 }
 0x167   :  { %831 = vmatprep.mubr.f32.mxu0 %v1425_v51 }
 0x16a   :  { %832 = vmatmul.mubr.f32.gmra.mxu0 %v637_v49 }
 0x16b   :  { %837 = vmatprep.mubr.f32.mxu0 %v1425_v51 }
 0x16e   :  { %838 = vmatmul.mubr.f32.gmra.mxu0 %v638_v33 }
 0x16f   :  { %843 = vmatprep.mubr.f32.mxu0 %v1425_v51 }
 0x172   :  { %844 = vmatmul.mubr.f32.gmra.mxu0 %v639_v52  ;;  %v669_v52 = vpop.permute.xlu1 %668 }
 0x173   :  { %849 = vmatprep.mubr.f32.mxu0 %v1425_v51 }
 0x176   :  { %850 = vmatmul.mubr.f32.gmra.mxu0 %v640_v53 }
 0x177   :  { %855 = vmatprep.mubr.f32.mxu0 %v1425_v51 }
 0x17a   :  { %856 = vmatmul.mubr.f32.gmra.mxu0 %v641_v39 }
 0x17b   :  { %861 = vmatprep.mubr.f32.mxu0 %v1425_v51 }
 0x17e   :  { %862 = vmatmul.mubr.f32.gmra.mxu0 %v642_v46 }
 0x202   :  { %v1957_v29 = vpop.f32.mrf.mxu0 }
 0x204   :  { %v1959_v48 = vpop.f32.mrf.mxu0 }
 0x206   :  { %v1961_v35 = vpop.f32.mrf.mxu0 }
 0x208   :  { %v1963_v54 = vpop.f32.mrf.mxu0 }
 0x20a   :  { %v1965_v3 = vpop.f32.mrf.mxu0 }
 0x20c   :  { %v1967_v57 = vpop.f32.mrf.mxu0 }
 0x20e   :  { %v1969_v2 = vpop.f32.mrf.mxu0 }
 0x210   :  { %v1971_v30 = vpop.f32.mrf.mxu0 }
 0x212   :  { %v1973_v44 = vpop.f32.mrf.mxu0 }
 0x214   :  { %v1975_v47 = vpop.f32.mrf.mxu0 }
 0x216   :  { %v1977_v59 = vpop.f32.mrf.mxu0 }
 0x218   :  { %v1979_v43 = vpop.f32.mrf.mxu0 }
 0x21a   :  { %v1981_v60 = vpop.f32.mrf.mxu0 }
 0x21c   :  { %v1983_v13 = vpop.f32.mrf.mxu0 }
 0x21e   :  { %v1985_v25 = vpop.f32.mrf.mxu0 }
 0x220   :  { %v1987_v61 = vpop.f32.mrf.mxu0 }
 0x222   :  { %v821_v32 = vpop.f32.mrf.mxu0 }
 0x224   :  { %v823_v14 = vpop.f32.mrf.mxu0 }
 0x226   :  { %v827_v21 = vpop.f32.mrf.mxu0 }
 0x228   :  { %v829_v58 = vpop.f32.mrf.mxu0 }
 0x22a   :  { %v833_v28 = vpop.f32.mrf.mxu0 }
 0x22b   :  { %v834_v46 = vadd.f32 %v833_v28, %v685_v27  ;;  %v816_v28 = vadd.f32 %v1985_v25, %v673_v23 }
 0x22c   :  { %v835_v40 = vpop.f32.mrf.mxu0 }
 0x22d   :  { %v836_v53 = vadd.f32 %v835_v40, %v685_v27  ;;  %v818_v40 = vadd.f32 %v1987_v61, %v673_v23 }
 0x22e   :  { %v839_v15 = vpop.f32.mrf.mxu0 }
 0x22f   :  { %v840_v49 = vadd.f32 %v839_v15, %v689_v11  ;;  %v822_v15 = vadd.f32 %v821_v32, %v677_v34 }
 0x230   :  { %v841_v18 = vpop.f32.mrf.mxu0 }
 0x231   :  { %v842_v36 = vadd.f32 %v841_v18, %v689_v11  ;;  %v824_v18 = vadd.f32 %v823_v14, %v677_v34  ;;  %v810_v14 = vadd.f32 %v1981_v60, %v669_v52  ;;  %v884_v27 = vmax.f32 %v822_v15, 0.0 }
 0x232   :  { %v845_v19 = vpop.f32.mrf.mxu0 }
 0x233   :  { %v846_v55 = vadd.f32 %v845_v19, %v693_v10  ;;  %v828_v19 = vadd.f32 %v827_v21, %v681_v26  ;;  %v812_v21 = vadd.f32 %v1983_v13, %v669_v52  ;;  %v906_v52 = vld [vmem:[%s2080_s3 + $0x30] sm:$0xff] }
 0x234   :  { %v847_v31 = vpop.f32.mrf.mxu0 }
 0x235   :  { %v848_v56 = vadd.f32 %v847_v31, %v693_v10  ;;  %v891_v31 = vmax.f32 %v842_v36, 0.0  ;;  %v889_v10 = vmax.f32 %v836_v53, 0.0  ;;  %v907_v53 = vld [vmem:[%s2080_s3 + $0x38] sm:$0xff] }
 0x236   :  { %v851_v6 = vpop.f32.mrf.mxu0 }
 0x237   :  { %v852_v17 = vadd.f32 %v851_v6, %v697_v38  ;;  %v893_v39 = vmax.f32 %v848_v56, 0.0  ;;  %v665_v6 = vpop.permute.xlu0 %664 }
 0x238   :  { %v853_v7 = vpop.f32.mrf.mxu0  ;;  %v804_v61 = vadd.f32 %v1977_v59, %v665_v6 }
 0x239   :  { %v854_v8 = vadd.f32 %v853_v7, %v697_v38  ;;  %v894_v33 = vmax.f32 %v852_v17, 0.0  ;;  %v830_v38 = vadd.f32 %v829_v58, %v681_v26  ;;  %v888_v7 = vmax.f32 %v834_v46, 0.0  ;;  %v1396_v46 = vld [vmem:[%s2083_s6 + $0x18] sm:$0xff] }
 0x23a   :  { %v857_v16 = vpop.f32.mrf.mxu0  ;;  %v886_v58 = vmax.f32 %v828_v19, 0.0  ;;  %v878_v34 = vmax.f32 %v804_v61, 0.0 }
 0x23b   :  { %v858_v41 = vadd.f32 %v857_v16, %v701_v62  ;;  %v895_v24 = vmax.f32 %v854_v8, 0.0  ;;  %v661_v16 = vpop.permute.xlu1 %660  ;;  %v887_v11 = vmax.f32 %v830_v38, 0.0  ;;  %v657_v32 = vpop.permute.xlu0 %656  ;;  %v1398_v38 = vld [vmem:[%s2083_s6 + $0x8] sm:$0xff] }
 0x23c   :  { %v859_v1 = vpop.f32.mrf.mxu0  ;;  %v800_v26 = vadd.f32 %v1975_v47, %v661_v16  ;;  %v798_v13 = vadd.f32 %v1973_v44, %v661_v16  ;;  %v794_v60 = vadd.f32 %v1971_v30, %v657_v32 }
 0x23d   :  { %v860_v20 = vadd.f32 %v859_v1, %v701_v62  ;;  %v896_v0 = vmax.f32 %v858_v41, 0.0  ;;  %v890_v62 = vmax.f32 %v840_v49, 0.0  ;;  %v885_v1 = vmax.f32 %v824_v18, 0.0  ;;  %v904_v49 = vld [vmem:[%s2080_s3 + $0x20] sm:$0xff] }
 0x23e   :  { %v863_v5 = vpop.f32.mrf.mxu0  ;;  %v876_v17 = vmax.f32 %v798_v13, 0.0  ;;  %v875_v56 = vmax.f32 %v794_v60, 0.0 }
 0x23f   :  { %v864_v63 = vadd.f32 %v863_v5, %v705_v12  ;;  %v897_v22 = vmax.f32 %v860_v20, 0.0  ;;  %v806_v5 = vadd.f32 %v1979_v43, %v665_v6  ;;  %v653_v25 = vpop.permute.xlu1 %652  ;;  %v881_v20 = vmax.f32 %v812_v21, 0.0  ;;  %v649_v59 = vpop.permute.xlu0 %648 }
 0x240   :  { %v865_v4 = vpop.f32.mrf.mxu0  ;;  %v792_v43 = vadd.f32 %v1969_v2, %v657_v32  ;;  %v788_v8 = vadd.f32 %v1967_v57, %v653_v25  ;;  %v786_v47 = vadd.f32 %v1965_v3, %v653_v25  ;;  %v780_v30 = vadd.f32 %v1961_v35, %v649_v59  ;;  %v900_v35 = vld [vmem:[%s2080_s3] sm:$0xff] }
 0x241   :  { %v866_v37 = vadd.f32 %v865_v4, %v705_v12  ;;  %v898_v50 = vmax.f32 %v864_v63, 0.0  ;;  %v892_v12 = vmax.f32 %v846_v55, 0.0  ;;  %v883_v63 = vmax.f32 %v818_v40, 0.0 }
 0x242   :  { %v882_v4 = vmax.f32 %v816_v28, 0.0  ;;  %v879_v41 = vmax.f32 %v806_v5, 0.0  ;;  %v873_v55 = vmax.f32 %v788_v8, 0.0  ;;  %v870_v23 = vmax.f32 %v780_v30, 0.0 }
 0x243   :  { %v899_v9 = vmax.f32 %v866_v37, 0.0  ;;  %v880_v37 = vmax.f32 %v810_v14, 0.0  ;;  %v645_v44 = vpop.permute.xlu1 %644 }
 0x244   :  { %v776_v2 = vadd.f32 %v1959_v48, %v645_v44  ;;  %v774_v57 = vadd.f32 %v1957_v29, %v645_v44  ;;  %v901_v29 = vld [vmem:[%s2080_s3 + $0x8] sm:$0xff]  ;;  %v902_v48 = vld [vmem:[%s2080_s3 + $0x10] sm:$0xff] }
 0x245   :  { %940 = vmatprep.subr.mxu1 %v899_v9  ;;  %v877_v9 = vmax.f32 %v800_v26, 0.0 }
 0x246   :  { %941 = vmatpush1.msra.mxu1 %v898_v50  ;;  %v782_v50 = vadd.f32 %v1963_v54, %v649_v59  ;;  %v869_v36 = vmax.f32 %v776_v2, 0.0  ;;  %v868_v54 = vmax.f32 %v774_v57, 0.0 }
 0x247   :  { %942 = vmatprep.subr.mxu1 %v897_v22  ;;  %v874_v22 = vmax.f32 %v792_v43, 0.0 }
 0x248   :  { %943 = vmatpush1.msra.mxu1 %v896_v0  ;;  %v872_v0 = vmax.f32 %v786_v47, 0.0  ;;  %v871_v3 = vmax.f32 %v782_v50, 0.0 }
 0x249   :  { %944 = vmatprep.subr.mxu1 %v895_v24  ;;  %v903_v24 = vld [vmem:[%s2080_s3 + $0x18] sm:$0xff] }
 0x24a   :  { %945 = vmatpush1.msra.mxu1 %v894_v33  ;;  %v905_v33 = vld [vmem:[%s2080_s3 + $0x28] sm:$0xff] }
 0x24b   :  { %946 = vmatprep.subr.mxu1 %v893_v39  ;;  %v1426_v39 = vmov 3  }
 0x24c   :  { %947 = vmatpush1.msra.mxu1 %v892_v12  ;;  %1385 = vset.pattern.permute.xlu1 %v1426_v39  ;;  %v1397_v12 = vld [vmem:[%s2083_s6 + $0x10] sm:$0xff] }
 0x24d   :  { %948 = vmatprep.subr.mxu1 %v891_v31  ;;  %1386 = vset.pattern.permute.xlu0 %v1426_v39  ;;  %v2049_v31 = vld [vmem:[%s2083_s6] sm:$0xff] }
 0x24e   :  { %949 = vmatpush1.msra.mxu1 %v890_v62  ;;  %1086 = vperm.xlu1 %1385, %v1396_v46   ;;  %v1069_v39 = vld [vmem:[%s2081_s4] sm:$0xff]  ;;  %v1070_v46 = vld [vmem:[%s2081_s4 + $0x8] sm:$0xff] }
 0x24f   :  { %950 = vmatprep.subr.mxu1 %v889_v10  ;;  %1082 = vperm.xlu0 %1386, %v1397_v12   ;;  %v1071_v12 = vld [vmem:[%s2081_s4 + $0x10] sm:$0xff] }
 0x250   :  { %951 = vmatpush1.msra.mxu1 %v888_v7 }
 0x251   :  { %952 = vmatprep.subr.mxu1 %v887_v11 }
 0x252   :  { %953 = vmatpush1.msra.mxu1 %v886_v58  ;;  %1078 = vperm.xlu1 %1385, %v1398_v38   ;;  %v934_v58 = vpop.permute.xlu1 %933  ;;  %v1072_v38 = vld [vmem:[%s2081_s4 + $0x18] sm:$0xff] }
 0x253   :  { %954 = vmatprep.subr.mxu1 %v885_v1  ;;  %v938_v1 = vpop.permute.xlu0 %937 }
 0x254   :  { %955 = vmatpush1.msra.mxu1 %v884_v27 }
 0x255   :  { %956 = vmatprep.subr.mxu1 %v883_v63 }
 0x256   :  { %957 = vmatpush1.msra.mxu1 %v882_v4  ;;  %1074 = vperm.xlu1 %1385, %v2049_v31   ;;  %v930_v32 = vpop.permute.xlu1 %929 }
 0x257   :  { %958 = vmatprep.subr.mxu1 %v881_v20  ;;  %v926_v63 = vpop.permute.xlu0 %925 }
 0x258   :  { %959 = vmatpush1.msra.mxu1 %v880_v37 }
 0x259   :  { %960 = vmatprep.subr.mxu1 %v879_v41 }
 0x25a   :  { %961 = vmatpush1.msra.mxu1 %v878_v34  ;;  %v922_v13 = vpop.permute.xlu1 %921 }
 0x25b   :  { %962 = vmatprep.subr.mxu1 %v877_v9  ;;  %v918_v34 = vpop.permute.xlu0 %917 }
 0x25c   :  { %963 = vmatpush1.msra.mxu1 %v876_v17 }
 0x25d   :  { %964 = vmatprep.subr.mxu1 %v875_v56 }
 0x25e   :  { %965 = vmatpush1.msra.mxu1 %v874_v22  ;;  %v914_v30 = vpop.permute.xlu1 %913 }
 0x25f   :  { %966 = vmatprep.subr.mxu1 %v873_v55 }
 0x260   :  { %967 = vmatpush1.msra.mxu1 %v872_v0  ;;  %v910_v0 = vpop.permute.xlu0 %909 }
 0x261   :  { %968 = vmatprep.subr.mxu1 %v871_v3 }
 0x262   :  { %969 = vmatpush1.msra.mxu1 %v870_v23 }
 0x263   :  { %970 = vmatprep.subr.mxu1 %v869_v36 }
 0x264   :  { %971 = vmatpush1.msra.mxu1 %v868_v54 }
 0x265   :  { %1005 = vmatmul.mubr.f32.vlgmr.msra.gmra.mxu1 %v900_v35 }
 0x266   :  { %1010 = vmatprep.mubr.f32.mxu1 %v1425_v51 }
 0x269   :  { %1011 = vmatmul.mubr.f32.gmra.mxu1 %v901_v29 }
 0x26a   :  { %1016 = vmatprep.mubr.f32.mxu1 %v1425_v51 }
 0x26d   :  { %1017 = vmatmul.mubr.f32.gmra.mxu1 %v902_v48 }
 0x26e   :  { %1022 = vmatprep.mubr.f32.mxu1 %v1425_v51 }
 0x271   :  { %1023 = vmatmul.mubr.f32.gmra.mxu1 %v903_v24 }
 0x272   :  { %1028 = vmatprep.mubr.f32.mxu1 %v1425_v51 }
 0x275   :  { %1029 = vmatmul.mubr.f32.gmra.mxu1 %v904_v49 }
 0x276   :  { %1034 = vmatprep.mubr.f32.mxu1 %v1425_v51 }
 0x279   :  { %1035 = vmatmul.mubr.f32.gmra.mxu1 %v905_v33 }
 0x27a   :  { %1040 = vmatprep.mubr.f32.mxu1 %v1425_v51 }
 0x27d   :  { %1041 = vmatmul.mubr.f32.gmra.mxu1 %v906_v52 }
 0x27e   :  { %1046 = vmatprep.mubr.f32.mxu1 %v1425_v51 }
 0x281   :  { %1047 = vmatmul.mubr.f32.gmra.mxu1 %v907_v53 }
 0x282   :  { %1166 = vmatprep.mubr.f32.mxu1 %v1425_v51 }
 0x325   :  { %v1006_v19 = vpop.f32.mrf.mxu1 }
 0x326   :  { %v1007_v48 = vadd.f32 %v1006_v19, %v910_v0  ;;  %v1427_v19 = vmov 4  }
 0x327   :  { %v1008_v62 = vpop.f32.mrf.mxu1  ;;  %1387 = vset.pattern.permute.xlu0 %v1427_v19 }
 0x328   :  { %v1009_v35 = vadd.f32 %v1008_v62, %v910_v0  ;;  %v1053_v53 = vmax.f32 %v1007_v48, 0.0  ;;  %1201 = vperm.xlu0 %1387, %v2049_v31  }
 0x329   :  { %v1012_v6 = vpop.f32.mrf.mxu1 }
 0x32a   :  { %v1013_v36 = vadd.f32 %v1012_v6, %v914_v30  ;;  %v1054_v52 = vmax.f32 %v1009_v35, 0.0 }
 0x32b   :  { %v1014_v18 = vpop.f32.mrf.mxu1 }
 0x32c   :  { %v1015_v3 = vadd.f32 %v1014_v18, %v914_v30  ;;  %v1055_v33 = vmax.f32 %v1013_v36, 0.0 }
 0x32d   :  { %v1018_v10 = vpop.f32.mrf.mxu1 }
 0x32e   :  { %v1019_v55 = vadd.f32 %v1018_v10, %v918_v34  ;;  %v1056_v49 = vmax.f32 %v1015_v3, 0.0  ;;  %v1087_v10 = vpop.permute.xlu1 %1086 }
 0x32f   :  { %v1020_v15 = vpop.f32.mrf.mxu1 }
 0x330   :  { %v1021_v22 = vadd.f32 %v1020_v15, %v918_v34  ;;  %v1057_v24 = vmax.f32 %v1019_v55, 0.0  ;;  %v1428_v55 = vmov 1966171168  }
 0x331   :  { %v1024_v7 = vpop.f32.mrf.mxu1 }
 0x332   :  { %v1025_v50 = vadd.f32 %v1024_v7, %v922_v13  ;;  %v1058_v29 = vmax.f32 %v1021_v22, 0.0 }
 0x333   :  { %v1026_v16 = vpop.f32.mrf.mxu1 }
 0x334   :  { %v1027_v17 = vadd.f32 %v1026_v16, %v922_v13  ;;  %v1059_v54 = vmax.f32 %v1025_v50, 0.0 }
 0x335   :  { %v1030_v40 = vpop.f32.mrf.mxu1 }
 0x336   :  { %v1031_v9 = vadd.f32 %v1030_v40, %v926_v63  ;;  %v1060_v23 = vmax.f32 %v1027_v17, 0.0  ;;  %v1079_v40 = vpop.permute.xlu1 %1078 }
 0x337   :  { %v1032_v11 = vpop.f32.mrf.mxu1 }
 0x338   :  { %v1033_v59 = vadd.f32 %v1032_v11, %v926_v63  ;;  %v1061_v57 = vmax.f32 %v1031_v9, 0.0 }
 0x339   :  { %v1036_v28 = vpop.f32.mrf.mxu1 }
 0x33a   :  { %v1037_v41 = vadd.f32 %v1036_v28, %v930_v32  ;;  %v1062_v2 = vmax.f32 %v1033_v59, 0.0  ;;  %v1083_v28 = vpop.permute.xlu0 %1082 }
 0x33b   :  { %v1038_v21 = vpop.f32.mrf.mxu1 }
 0x33c   :  { %v1039_v37 = vadd.f32 %v1038_v21, %v930_v32  ;;  %v1063_v56 = vmax.f32 %v1037_v41, 0.0  ;;  %v1075_v32 = vpop.permute.xlu1 %1074  ;;  %v1199_v41 = vld [vmem:[%s2082_s5] sm:$0x1]  ;;  %s1429_s5 = smov [#allocation2]  }
 0x33d   :  { %v1042_v14 = vpop.f32.mrf.mxu1  ;;  %s1320_s1 = sshll.u32 %s1429_s5, 4  ;;  %s1321_s1 = int_to_ptr.vmem [resolvable:$true] %s1320_s1 }
 0x33e   :  { %v1043_v20 = vadd.f32 %v1042_v14, %v934_v58  ;;  %v1064_v44 = vmax.f32 %v1039_v37, 0.0  ;;  %s1400_s30 = scalar_lea.vmem %s1321_s1, 32  ;;  %p1405_p1 = scmp.lt.s32.totalorder %s1321_s1, %s1321_s1 }
 0x33f   :  { %v1044_v27 = vpop.f32.mrf.mxu1  ;;  %p1401_p0 = scmp.ne.s32.totalorder %s1321_s1, %s1400_s30  ;;  %p1406_p2 = scmp.lt.s32.totalorder %s1400_s30, %s1400_s30 }
 0x340   :  { %v1045_v25 = vadd.f32 %v1044_v27, %v934_v58  ;;  %v1065_v47 = vmax.f32 %v1043_v20, 0.0 }
 0x341   :  { %v1048_v5 = vpop.f32.mrf.mxu1  ;;  %p1407_p3 = por %p1406_p2, %p1405_p1 }
 0x342   :  { %v1049_v61 = vadd.f32 %v1048_v5, %v938_v1  ;;  %v1066_v8 = vmax.f32 %v1045_v25, 0.0 }
 0x343   :  { %v1050_v4 = vpop.f32.mrf.mxu1  ;;  %p1408_p4 = pnand %p1407_p3, %p1401_p0 }
 0x344   :  { %v1051_v26 = vadd.f32 %v1050_v4, %v938_v1  ;;  %v1067_v43 = vmax.f32 %v1049_v61, 0.0 }
 0x346   :  { %v1068_v60 = vmax.f32 %v1051_v26, 0.0 }
 0x348   :  { %1118 = vmatprep.subr.mxu1 %v1068_v60 }
 0x349   :  { %1119 = vmatpush1.msra.mxu1 %v1067_v43 }
 0x34a   :  { %1120 = vmatprep.subr.mxu1 %v1066_v8 }
 0x34b   :  { %1121 = vmatpush1.msra.mxu1 %v1065_v47 }
 0x34c   :  { %1122 = vmatprep.subr.mxu1 %v1064_v44 }
 0x34d   :  { %1123 = vmatpush1.msra.mxu1 %v1063_v56 }
 0x34e   :  { %1124 = vmatprep.subr.mxu1 %v1062_v2 }
 0x34f   :  { %1125 = vmatpush1.msra.mxu1 %v1061_v57  ;;  %v1295_v57 = vunpack.c.l.s4 %v1428_v55 }
 0x350   :  { %1126 = vmatprep.subr.mxu1 %v1060_v23 }
 0x351   :  { %1127 = vmatpush1.msra.mxu1 %v1059_v54  ;;  %v1296_v0 = vunpack.c.0.s8 %v1295_v57 }
 0x352   :  { %1128 = vmatprep.subr.mxu1 %v1058_v29 }
 0x353   :  { %1129 = vmatpush1.msra.mxu1 %v1057_v24  ;;  %v1299_v23 = vsub.s32 %v1296_v0, %v1678_v45 }
 0x354   :  { %1130 = vmatprep.subr.mxu1 %v1056_v49 }
 0x355   :  { %1131 = vmatpush1.msra.mxu1 %v1055_v33 }
 0x356   :  { %1132 = vmatprep.subr.mxu1 %v1054_v52 }
 0x357   :  { %1133 = vmatpush1.msra.mxu1 %v1053_v53 }
 0x358   :  { %1328 = vmatmul.mubr.msk.f32.vlgmr.msra.gmra.mxu1 %vm1089_vm0, %v1069_v39 }
 0x359   :  { %1172 = vmatprep.mubr.f32.mxu1 %v1425_v51 }
 0x35c   :  { %1329 = vmatmul.mubr.msk.f32.gmra.mxu1 %vm1089_vm0, %v1070_v46 }
 0x35d   :  { %1178 = vmatprep.mubr.f32.mxu1 %v1425_v51 }
 0x360   :  { %1330 = vmatmul.mubr.msk.f32.gmra.mxu1 %vm1089_vm0, %v1071_v12 }
 0x361   :  { %1184 = vmatprep.mubr.f32.mxu1 %v1425_v51 }
 0x364   :  { %1331 = vmatmul.mubr.msk.f32.gmra.mxu1 %vm1089_vm0, %v1072_v38 }
 0x365   :  { %1272 = vmatprep.mubr.f32.mxu1 %v1425_v51 }
 0x3a3   :  { %v1202_v43 = vpop.permute.xlu0 %1201 }
 0x418   :  { %v1168_v62 = vpop.f32.mrf.mxu1 }
 0x419   :  { %v1169_v25 = vadd.f32 %v1168_v62, %v1075_v32 }
 0x41a   :  { %v1170_v6 = vpop.f32.mrf.mxu1 }
 0x41b   :  { %v1171_v61 = vadd.f32 %v1170_v6, %v1075_v32  ;;  %v1191_v60 = vmax.f32 %v1169_v25, 0.0 }
 0x41c   :  { %v1174_v18 = vpop.f32.mrf.mxu1 }
 0x41d   :  { %v1175_v63 = vadd.f32 %v1174_v18, %v1079_v40  ;;  %v1192_v37 = vmax.f32 %v1171_v61, 0.0 }
 0x41e   :  { %v1176_v15 = vpop.f32.mrf.mxu1 }
 0x41f   :  { %v1177_v51 = vadd.f32 %v1176_v15, %v1079_v40  ;;  %v1193_v13 = vmax.f32 %v1175_v63, 0.0 }
 0x420   :  { %v1180_v7 = vpop.f32.mrf.mxu1 }
 0x421   :  { %v1181_v27 = vadd.f32 %v1180_v7, %v1083_v28  ;;  %v1194_v20 = vmax.f32 %v1177_v51, 0.0 }
 0x422   :  { %v1182_v16 = vpop.f32.mrf.mxu1 }
 0x423   :  { %v1183_v14 = vadd.f32 %v1182_v16, %v1083_v28  ;;  %v1195_v26 = vmax.f32 %v1181_v27, 0.0 }
 0x424   :  { %v1186_v11 = vpop.f32.mrf.mxu1 }
 0x425   :  { %v1187_v58 = vadd.f32 %v1186_v11, %v1087_v10  ;;  %v1196_v4 = vmax.f32 %v1183_v14, 0.0 }
 0x426   :  { %v1188_v21 = vpop.f32.mrf.mxu1 }
 0x427   :  { %v1189_v1 = vadd.f32 %v1188_v21, %v1087_v10  ;;  %v1197_v31 = vmax.f32 %v1187_v58, 0.0 }
 0x429   :  { %v1198_v5 = vmax.f32 %v1189_v1, 0.0 }
 0x42b   :  { %1232 = vmatprep.subr.mxu1 %v1198_v5 }
 0x42c   :  { %1233 = vmatpush1.msra.mxu1 %v1197_v31 }
 0x42d   :  { %1234 = vmatprep.subr.mxu1 %v1196_v4 }
 0x42e   :  { %1235 = vmatpush1.msra.mxu1 %v1195_v26 }
 0x42f   :  { %1236 = vmatprep.subr.mxu1 %v1194_v20 }
 0x430   :  { %1237 = vmatpush1.msra.mxu1 %v1193_v13 }
 0x431   :  { %1238 = vmatprep.subr.mxu1 %v1192_v37 }
 0x432   :  { %1239 = vmatpush1.msra.mxu1 %v1191_v60 }
 0x433   :  { %1332 = vmatmul.mubr.msk.f32.vlgmr.msra.gmra.mxu1 %vm1204_vm1, %v1199_v41 }
 0x4f3   :  { %v1274_v34 = vpop.f32.mrf.mxu1 }
 0x4f4   :  { %v1275_v59 = vadd.f32 %v1274_v34, %v1202_v43 }
 0x4f5   :  { %v1276_v8 = vpop.f32.mrf.mxu1 }
 0x4f6   :  { %v1279_v9 = vsub.f32 0.0, %v1275_v59  ;;  %v1277_v47 = vadd.f32 %v1276_v8, %v1202_v43 }
 0x4f8   :  { %v1281_v17 = vmul.f32 1.442695, %v1279_v9  ;;  %v1280_v44 = vsub.f32 0.0, %v1277_v47 }
 0x4fa   :  { %1388 = vpow2.f32 %v1281_v17  ;;  %v1283_v50 = vmul.f32 1.442695, %v1280_v44 }
 0x4fc   :  { %1390 = vpow2.f32 %v1283_v50 }
 0x507   :  { %v1389_v56 = vpop.eup %1388 }
 0x508   :  { %v1285_v30 = vadd.f32 1.0, %v1389_v56 }
 0x509   :  { %v1391_v22 = vpop.eup %1390 }
 0x50a   :  { %v1286_v2 = vadd.f32 1.0, %v1391_v22  ;;  %1392 = vrcp.f32 %v1285_v30 }
 0x50c   :  { %1394 = vrcp.f32 %v1286_v2 }
 0x517   :  { %v1393_v3 = vpop.eup %1392 }
 0x519   :  { %v1395_v36 = vpop.eup %1394 }
 0x51a   :  { %v1293_v54 = vcombine.low %v1393_v3, %v1395_v36 }
 0x51c   :  { %v1300_v35 = vrot.slane %v1293_v54, %v1299_v23 }
 0x51e   :  { %v1307_v29 = vrot.slane %v1300_v35, %v1299_v23 }
 0x520   :  { %1313 = vst.msk [vmem:[#allocation2] sm:$0x3] %vm1311_vm2, %v1307_v29 }
 0x521   :  { %1411 = shalt.err (!%p1408_p4)
}
 0x522   :  { %1323 = dma.vmem_to_hbm [thread:$0]  %s1321_s1, 32, %s2084_s7, [#allocation3]  }
 0x523   :  { %1420 = dma.done.wait [#allocation3], 32  }
 0x524   :  { %1421 = vsyncadd [#allocation3], 4294967264 }
 0x525   :  { %1327 = vsyncpa [#allocation3], 1 }

</bundles_post_ra>
